<compile_context>
chip_gen: v6e
topology: v6e:2x2x1
jax: 0.10.0
libtpu: 0.0.40
codegen_flags: <defaults>
</compile_context>

<pallas_src>
import functools

import jax
import jax.numpy as jnp
from jax.experimental import pallas as pl
from jax.experimental.pallas import tpu as pltpu


def _closs_row_kernel(logits_ref, labels_ref, out_ref):
    """Per-row hinge statistics, stacked into one (TN, 3) tile.

    out[:, 0] = HardHingeLoss = max(0, 1 - l_true + (m2 if pred==label else m1))
    out[:, 1] = SoftHingeLoss = max(0, 1 - l_true + (m2 if pred==label else lse))
    out[:, 2] = wrong         = float(pred != label)

    `pred == label` is evaluated as `l_true >= m2` (label logit is a row max),
    which differs from the PyTorch topk-index path only on exact floating-point
    ties between the label logit and another class's logit (torch's own tie
    order is unspecified).
    """
    x = logits_ref[...]                               # (TN, C) native dtype
    lbl = labels_ref[...]                             # (TN, 1) int32
    tn, c = x.shape

    col = jax.lax.broadcasted_iota(jnp.int32, (tn, c), 1)
    is_lbl = col == lbl
    neg_inf = jnp.array(-jnp.inf, dtype=x.dtype)

    # Masked maxes / compares are exact in bf16/f16/f32 -> keep them in the
    # input's native dtype; upcast only the (TN, 1) results.
    l_true = jnp.max(jnp.where(is_lbl, x, neg_inf), axis=1,
                     keepdims=True).astype(jnp.float32)     # label-column logit
    m2 = jnp.max(jnp.where(is_lbl, neg_inf, x), axis=1,
                 keepdims=True).astype(jnp.float32)         # max excluding label
    # Overall max == max(label logit, max excluding label): no 3rd full reduce.
    m1 = jnp.maximum(l_true, m2)

    # logsumexp over classes (== the module's custom `logsumexp`), f32 on EUP.
    xf = x.astype(jnp.float32)
    lse = m1 + jnp.log(jnp.sum(jnp.exp(xf - m1), axis=1, keepdims=True))

    f1 = l_true >= m2                                  # label logit is the max
    hard = jnp.maximum(1.0 - l_true + jnp.where(f1, m2, m1), 0.0)   # (TN, 1)
    soft = jnp.maximum(1.0 - l_true + jnp.where(f1, m2, lse), 0.0)  # (TN, 1)
    wrong = jnp.where(f1, 0.0, 1.0)                                 # (TN, 1)

    # Stack into a single (TN, 3) tile -> one output store / DMA per grid step.
    j = jax.lax.broadcasted_iota(jnp.int32, (tn, 3), 1)
    out_ref[...] = jnp.where(j == 0, hard, jnp.where(j == 1, soft, wrong))


def _round_up(x, m):
    return ((x + m - 1) // m) * m


@functools.lru_cache(maxsize=1)
def _vmem_capacity_bytes():
    """Physical VMEM bytes for this TPU generation (64 MiB fallback = v7x-safe)."""
    try:
        cap = getattr(pltpu.get_tpu_info(), "vmem_capacity_bytes", None)
        if cap:
            return int(cap)
    except Exception:
        pass
    return 64 * 1024 * 1024


def _row_stats(logits, labels, *, max_tile_n=32768):
    """Run the row-statistics kernel; returns (hard, soft, wrong), each [N] f32."""
    n, c = logits.shape
    in_itemsize = jnp.dtype(logits.dtype).itemsize

    vmem_cap = _vmem_capacity_bytes()
    # Leave headroom for compiler scratch; ~56 MiB on v7x, ~115 MiB on v5e/v6e.
    vmem_limit = int(min(vmem_cap - (8 << 20), int(vmem_cap * 0.9)))
    tile_budget = int(vmem_cap * 0.6)

    # Per-row VMEM footprint: double-buffered native-dtype input block plus ~4x
    # f32 temporaries (upcast, masked selects, exp) plus the tiny stacked output.
    per_row = 2 * c * in_itemsize + 4 * c * 4 + 2 * 3 * 4
    rows_by_vmem = max(8, (tile_budget // per_row) // 8 * 8)

    # Keep >= 2 grid steps whenever N > 8 so dimension_semantics=("parallel",)
    # can shard row tiles across both TensorCores on v7x.
    half_n = max(8, _round_up(-(-n // 2), 8))

    tile_n = max(8, min(rows_by_vmem, max_tile_n, half_n))
    grid_n = pl.cdiv(n, tile_n)   # last block may be partial: no host-side pad copy

    labels_2d = labels.astype(jnp.int32).reshape(n, 1)

    out = pl.pallas_call(
        _closs_row_kernel,
        out_shape=jax.ShapeDtypeStruct((n, 3), jnp.float32),
        grid_spec=pltpu.PrefetchScalarGridSpec(
            num_scalar_prefetch=0,
            grid=(grid_n,),
            in_specs=[
                pl.BlockSpec((tile_n, c), lambda i: (i, 0)),   # native-dtype DMA
                pl.BlockSpec((tile_n, 1), lambda i: (i, 0)),
            ],
            out_specs=pl.BlockSpec((tile_n, 3), lambda i: (i, 0)),
        ),
        compiler_params=pltpu.CompilerParams(
            dimension_semantics=("parallel",),   # shards row tiles across TCs (v7x)
            vmem_limit_bytes=vmem_limit,
        ),
    )(logits, labels_2d)

    return out[:, 0], out[:, 1], out[:, 2]


@functools.partial(jax.jit, static_argnames=("lrate", "nratio"))
def closs_forward(logits, labels, lrate=True, nratio=0.0):
    """JAX/Pallas port of CLoss.forward."""
    n = logits.shape[0]
    hard, soft, wrong = _row_stats(logits, labels)

    if not lrate:
        return jnp.mean(soft)

    # sort hard-hinge losses ascending
    order = jnp.argsort(hard)
    loss_sorted = hard[order]
    soft_sorted = soft[order]

    eps = nratio
    ls = jnp.cumsum(loss_sorted)                                  # [N]
    b = jnp.arange(0, -n, -1, dtype=jnp.float32)                  # [0,-1,...,-(N-1)]
    e = jnp.sum(wrong)                                            # misclassified
    c_const = (1.0 - eps) ** 2 * float(n) + (1.0 - eps) * e
    b = c_const + b

    mask = ls <= b
    num_selected = jnp.sum(mask.astype(jnp.int32))
    # torch indexing Ls[num_selected - 1] wraps to the last element when 0.
    idx = jnp.mod(num_selected - 1, n)
    upbound = (ls[idx] <= c_const - num_selected.astype(jnp.float32)).astype(jnp.float32)
    num_sel_f = jnp.minimum(jnp.round(num_selected.astype(jnp.float32) + upbound),
                            float(n))
    num_selected = num_sel_f.astype(jnp.int32)

    # mean of SoftHingeLoss over the first `num_selected` sorted samples.
    # NOTE: if num_selected resolves to 0 this is 0/0 -> NaN, matching torch's
    # mean over an empty selection.
    sel_mask = (jnp.arange(n) < num_selected).astype(jnp.float32)
    return jnp.sum(soft_sorted * sel_mask) / num_sel_f


def _reference_forward(logits, labels, lrate=True, nratio=0.0):
    """Pure-numpy reference mirroring the PyTorch module, for a sanity check."""
    import numpy as np
    x = np.asarray(logits, dtype=np.float64)
    y = np.asarray(labels)
    n, c = x.shape

    def hinge(soft):
        l1 = x[np.arange(n), y]
        srt = np.sort(x, axis=1)[:, ::-1]
        am = np.argmax(x, axis=1)
        m1, m2 = srt[:, 0], srt[:, 1]
        f1 = (am == y).astype(np.float64)
        if soft:
            lse = np.log(np.sum(np.exp(x - x.max(1, keepdims=True)), 1)) + x.max(1)
            u = lse * (1 - f1) + m2 * f1
        else:
            u = m1 * (1 - f1) + m2 * f1
        return np.maximum(1.0 - l1 + u, 0.0)

    hard = hinge(soft=False)
    soft = hinge(soft=True)
    if not lrate:
        return float(np.mean(soft))
    order = np.argsort(hard, kind="stable")   # stable, mirroring jnp.argsort
    ls = np.cumsum(hard[order])
    b = np.arange(0, -n, -1, dtype=np.float64)
    e = float(np.sum(np.argmax(x, 1) != y))
    c_const = (1 - nratio) ** 2 * n + (1 - nratio) * e
    mask = ls <= (c_const + b)
    num_selected = int(mask.sum())
    upbound = float(ls[num_selected - 1] <= c_const - num_selected)
    num_selected = int(min(round(num_selected + upbound), n))
    return float(np.mean(soft[order][:num_selected]))


if __name__ == "__main__":
    key = jax.random.PRNGKey(0)
    k1, k2, k3, k4, k5, k6 = jax.random.split(key, 6)

    # Case 1: small batch; the ceil(N/2) cap forces a 2-step ("parallel") grid.
    n1, c1 = 16, 32
    logits1 = jax.random.normal(k1, (n1, c1), dtype=jnp.float32) * 2.0
    labels1 = jax.random.randint(k2, (n1,), 0, c1, dtype=jnp.int32)
    out1 = jax.block_until_ready(closs_forward(logits1, labels1, lrate=True, nratio=0.0))
    ref1 = _reference_forward(logits1, labels1, lrate=True, nratio=0.0)
    assert abs(float(out1) - ref1) < 1e-4, (float(out1), ref1)

    # Case 2: N not a multiple of the row tile (exercises the partial last block,
    # no host-side pad copy) + nratio > 0.
    n2, c2 = 37, 10
    logits2 = jax.random.normal(k3, (n2, c2), dtype=jnp.float32) * 2.0
    labels2 = jax.random.randint(k4, (n2,), 0, c2, dtype=jnp.int32)
    out2 = jax.block_until_ready(closs_forward(logits2, labels2, lrate=True, nratio=0.1))
    ref2 = _reference_forward(logits2, labels2, lrate=True, nratio=0.1)
    assert abs(float(out2) - ref2) < 1e-4, (float(out2), ref2)

    # Case 3: Lrate=False path (plain mean of SoftHingeLoss).
    out3 = jax.block_until_ready(closs_forward(logits1, labels1, lrate=False, nratio=0.0))
    ref3 = _reference_forward(logits1, labels1, lrate=False, nratio=0.0)
    assert abs(float(out3) - ref3) < 1e-4, (float(out3), ref3)

    # Case 4: bf16 logits (native-dtype masked maxes + half-size HBM DMA); only a
    # finiteness check since bf16 rounding legitimately perturbs the selection.
    n4, c4 = 40, 16
    logits4 = (jax.random.normal(k5, (n4, c4), dtype=jnp.float32) * 2.0).astype(jnp.bfloat16)
    labels4 = jax.random.randint(k6, (n4,), 0, c4, dtype=jnp.int32)
    out4 = jax.block_until_ready(closs_forward(logits4, labels4, lrate=True, nratio=0.0))
    assert bool(jnp.isfinite(out4)), out4

    print("KERNEL_OK")
</pallas_src>

<mosaic_0001>
module attributes {stable_mosaic.version = 11 : i64} {
  func.func @_closs_row_kernel(%arg0: i32, %arg1: memref<8x32xf32, #tpu.memory_space<vmem>>, %arg2: memref<8x1xi32, #tpu.memory_space<vmem>>, %arg3: memref<8x3xf32, #tpu.memory_space<vmem>>) attributes {dimension_semantics = [#tpu.dimension_semantics<parallel>], iteration_bounds = array<i64: 2>, scalar_prefetch = 0 : i64, scratch_operands = 0 : i64, tpu.core_type = #tpu.core_type<tc>, window_params = [{transform_indices = @transform_0, window_bounds = array<i64: 8, 32>}, {transform_indices = @transform_1, window_bounds = array<i64: 8, 1>}, {transform_indices = @transform_2, window_bounds = array<i64: 8, 3>}]} {
    %c0 = arith.constant 0 : index
    %c0_0 = arith.constant 0 : index
    %0 = vector.load %arg1[%c0, %c0_0] : memref<8x32xf32, #tpu.memory_space<vmem>>, vector<8x32xf32>
    %c0_1 = arith.constant 0 : index
    %c0_2 = arith.constant 0 : index
    %1 = vector.load %arg2[%c0_1, %c0_2] : memref<8x1xi32, #tpu.memory_space<vmem>>, vector<8x1xi32>
    %2 = tpu.iota {dimensions = array<i32: 1>} : vector<8x32xi32>
    %3 = vector.broadcast %1 : vector<8x1xi32> to vector<8x32xi32>
    %4 = arith.cmpi eq, %2, %3 : vector<8x32xi32>
    %cst = arith.constant 0xFF800000 : f32
    %5 = vector.broadcast %cst : f32 to vector<8x32xf32>
    %6 = arith.select %4, %0, %5 : vector<8x32xi1>, vector<8x32xf32>
    %cst_3 = arith.constant dense<0xFF800000> : vector<8xf32>
    %7 = vector.multi_reduction <maximumf>, %6, %cst_3 [1] : vector<8x32xf32> to vector<8xf32>
    %8 = vector.shape_cast %7 : vector<8xf32> to vector<8x1xf32>
    %cst_4 = arith.constant 0xFF800000 : f32
    %9 = vector.broadcast %cst_4 : f32 to vector<8x32xf32>
    %10 = arith.select %4, %9, %0 : vector<8x32xi1>, vector<8x32xf32>
    %cst_5 = arith.constant dense<0xFF800000> : vector<8xf32>
    %11 = vector.multi_reduction <maximumf>, %10, %cst_5 [1] : vector<8x32xf32> to vector<8xf32>
    %12 = vector.shape_cast %11 : vector<8xf32> to vector<8x1xf32>
    %13 = arith.maximumf %8, %12 : vector<8x1xf32>
    %14 = vector.broadcast %13 : vector<8x1xf32> to vector<8x32xf32>
    %15 = arith.subf %0, %14 : vector<8x32xf32>
    %16 = math.exp %15 : vector<8x32xf32>
    %cst_6 = arith.constant dense<0.000000e+00> : vector<8xf32>
    %17 = vector.multi_reduction <add>, %16, %cst_6 [1] : vector<8x32xf32> to vector<8xf32>
    %18 = vector.shape_cast %17 : vector<8xf32> to vector<8x1xf32>
    %19 = math.log %18 : vector<8x1xf32>
    %20 = arith.addf %13, %19 : vector<8x1xf32>
    %21 = arith.cmpf oge, %8, %12 : vector<8x1xf32>
    %cst_7 = arith.constant 1.000000e+00 : f32
    %22 = vector.broadcast %cst_7 : f32 to vector<8x1xf32>
    %23 = arith.subf %22, %8 : vector<8x1xf32>
    %24 = arith.select %21, %12, %13 : vector<8x1xi1>, vector<8x1xf32>
    %25 = arith.addf %23, %24 : vector<8x1xf32>
    %cst_8 = arith.constant 0.000000e+00 : f32
    %26 = vector.broadcast %cst_8 : f32 to vector<8x1xf32>
    %27 = arith.maximumf %25, %26 : vector<8x1xf32>
    %cst_9 = arith.constant 1.000000e+00 : f32
    %28 = vector.broadcast %cst_9 : f32 to vector<8x1xf32>
    %29 = arith.subf %28, %8 : vector<8x1xf32>
    %30 = arith.select %21, %12, %20 : vector<8x1xi1>, vector<8x1xf32>
    %31 = arith.addf %29, %30 : vector<8x1xf32>
    %cst_10 = arith.constant 0.000000e+00 : f32
    %32 = vector.broadcast %cst_10 : f32 to vector<8x1xf32>
    %33 = arith.maximumf %31, %32 : vector<8x1xf32>
    %cst_11 = arith.constant 0.000000e+00 : f32
    %cst_12 = arith.constant 1.000000e+00 : f32
    %34 = vector.broadcast %cst_11 : f32 to vector<8x1xf32>
    %35 = vector.broadcast %cst_12 : f32 to vector<8x1xf32>
    %36 = arith.select %21, %34, %35 : vector<8x1xi1>, vector<8x1xf32>
    %37 = tpu.iota {dimensions = array<i32: 1>} : vector<8x3xi32>
    %c0_i32 = arith.constant 0 : i32
    %38 = vector.broadcast %c0_i32 : i32 to vector<8x3xi32>
    %39 = arith.cmpi eq, %37, %38 : vector<8x3xi32>
    %c1_i32 = arith.constant 1 : i32
    %40 = vector.broadcast %c1_i32 : i32 to vector<8x3xi32>
    %41 = arith.cmpi eq, %37, %40 : vector<8x3xi32>
    %42 = vector.shape_cast %33 : vector<8x1xf32> to vector<8x1xf32>
    %43 = vector.broadcast %42 : vector<8x1xf32> to vector<8x3xf32>
    %44 = vector.shape_cast %36 : vector<8x1xf32> to vector<8x1xf32>
    %45 = vector.broadcast %44 : vector<8x1xf32> to vector<8x3xf32>
    %46 = arith.select %41, %43, %45 : vector<8x3xi1>, vector<8x3xf32>
    %47 = vector.shape_cast %27 : vector<8x1xf32> to vector<8x1xf32>
    %48 = vector.broadcast %47 : vector<8x1xf32> to vector<8x3xf32>
    %49 = arith.select %39, %48, %46 : vector<8x3xi1>, vector<8x3xf32>
    %c0_13 = arith.constant 0 : index
    %c0_14 = arith.constant 0 : index
    %50 = vector.load %arg3[%c0_13, %c0_14] : memref<8x3xf32, #tpu.memory_space<vmem>>, vector<8x3xf32>
    tpu.vector_store %arg3[%c0_13, %c0_14], %49 {strides = array<i32>} : memref<8x3xf32, #tpu.memory_space<vmem>>, vector<8x3xf32>,
    return
  }
  func.func @transform_0(%arg0: i32) -> (i32, i32) {
    %c0_i32 = arith.constant 0 : i32
    %c0_i32_0 = arith.constant 0 : i32
    return %arg0, %c0_i32 : i32, i32
  }
  func.func @transform_1(%arg0: i32) -> (i32, i32) {
    %c0_i32 = arith.constant 0 : i32
    %c0_i32_0 = arith.constant 0 : i32
    return %arg0, %c0_i32 : i32, i32
  }
  func.func @transform_2(%arg0: i32) -> (i32, i32) {
    %c0_i32 = arith.constant 0 : i32
    %c0_i32_0 = arith.constant 0 : i32
    return %arg0, %c0_i32 : i32, i32
  }
}

</mosaic_0001>

<bundles_post_ra>
// kernel: closs_forward.1
= control target key start
LH: loop header
LB: loop body
LE: loop exit
PB: predicated region body
PF: predicated region fallthrough
CT: control target
= control target key end

     0   :  { %s313_s9 = smov 0   ;;  %s338_s0 = inlined_call_operand.vmem [shape: f32[16,32], index: 0, kind: input, shape index: {}]   ;;  %s339_s1 = inlined_call_operand.vmem [shape: s32[16,1], index: 1, kind: input, shape index: {}]   ;;  %s340_s2 = inlined_call_operand.vmem [shape: f32[16,3], index: 2, kind: output, shape index: {}]  }
   0x1 LB: > { %s263_s10 = sadd.s32 4294967295, %s294_s9   ;;  %p267_p0 = scmp.ge.s32.totalorder %s294_s9, 1  ;;  %s294_s9 = sphi %s313_s9, %s12_s9  }
   0x2   : > { %p120_p1 = scmp.lt.s32.totalorder %s294_s9, 3 }
   0x4   : > { %p121_p2 = pnand %p267_p0, %p120_p1 }
   0x5   : > { %p144_p3 = scmp.lt.s32.totalorder (!%p121_p2), %s263_s10, 1 }
   0x6   : > { %124 = sbr.rel (%p121_p2) target bundleno = 465 (0x1d1), region = 28 }
   0xb   : > { %v296_v0 = vmov 0   ;;  %s342_s10 = smov (!%p144_p3, %s263_s10), 1  ;;  %v158_v2 = vlaneseq  ;;  %vm165_vm0 = vcmask 261120   ;;  %v297_v28 = vmov 1.0  }
   0xc   : > { %283 = vset.pattern.permute.xlu0 %v296_v0  ;;  %s321_s11 = sshll.u32 %s342_s10, 3  ;;  %vm196_vm5 = vcmask 23552  }
   0xd   : > { %s151_s14 = scalar_lea.vmem %s339_s1, %s321_s11  ;;  %s147_s17 = scalar_lea.vmem %s338_s0, %s321_s11  ;;  %v159_v3 = vand.u32 127, %v158_v2 }
   0xe   : > { %v157_v1 = vld [vmem:[%s151_s14] sm:$0xff]  ;;  %s155_s20 = scalar_lea.vmem %s340_s2, %s321_s11 }
   0xf   : > { %161 = vperm.xlu0 %283, %v157_v1   ;;  %v156_v4 = vld [vmem:[%s147_s17] sm:$0xff]  ;;  %vm193_vm3 = vcmp.eq.s32.totalorder %v159_v3, 1  ;;  %vm192_vm4 = vcmp.eq.s32.totalorder %v159_v3, 0 }
  0x8a   : > { %v162_v5 = vpop.permute.xlu0 %161 }
  0x8b   : > { %vm163_vm1 = vcmp.eq.s32.totalorder %v159_v3, %v162_v5 }
  0x8c   : > { %v169_v6 = vsel %vm163_vm1, -inf, %v156_v4  ;;  %v164_v7 = vsel %vm163_vm1, %v156_v4, -inf }
  0x8d   : > { %v170_v8 = vsel %vm165_vm0, %v169_v6, -inf  ;;  %v166_v9 = vsel %vm165_vm0, %v164_v7, -inf }
  0x8e   : > { %171 = vmax.xlane.f32.xlu1 %v170_v8  ;;  %167 = vmax.xlane.f32.xlu0 %v166_v9 }
 0x117   : > { %v172_v10 = vpop.xlane.xlu1 %171  ;;  %v168_v11 = vpop.xlane.xlu0 %167 }
 0x118   : > { %v173_v12 = vmax.f32 %v168_v11, %v172_v10  ;;  %vm183_vm2 = vcmp.ge.f32.partialorder %v168_v11, %v172_v10  ;;  %v184_v19 = vsub.f32 1.0, %v168_v11 }
 0x119   : > { %v191_v29 = vsel %vm183_vm2, 0.0, %v297_v28 }
 0x11a   : > { %v174_v13 = vsub.f32 %v156_v4, %v173_v12  ;;  %v185_v21 = vsel %vm183_vm2, %v172_v10, %v173_v12 }
 0x11b   : > { %v186_v23 = vadd.f32 %v185_v21, %v184_v19 }
 0x11c   : > { %v175_v14 = vmul.f32 1.442695, %v174_v13 }
 0x11d   : > { %v187_v27 = vmax.f32 %v186_v23, 0.0 }
 0x11e   : > { %284 = vpow2.f32 %v175_v14 }
 0x12b   : > { %v285_v15 = vpop.eup %284 }
 0x12c   : > { %v177_v16 = vsel %vm165_vm0, %v285_v15, 0.0 }
 0x12d   : > { %178 = vadd.xlane.f32.xlu1 %v177_v16 }
 0x1b6   : > { %v179_v17 = vpop.xlane.xlu1 %178 }
 0x1b7   : > { %286 = vlog2.f32 %v179_v17 }
 0x1c4   : > { %v287_v18 = vpop.eup %286 }
 0x1c5   : > { %v181_v20 = vmul.f32 0.6931472, %v287_v18 }
 0x1c7   : > { %v182_v22 = vadd.f32 %v181_v20, %v173_v12 }
 0x1c9   : > { %v188_v24 = vsel %vm183_vm2, %v172_v10, %v182_v22 }
 0x1ca   : > { %v189_v25 = vadd.f32 %v188_v24, %v184_v19 }
 0x1cc   : > { %v190_v26 = vmax.f32 %v189_v25, 0.0 }
 0x1ce   : > { %v194_v30 = vsel %vm193_vm3, %v190_v26, %v191_v29 }
 0x1cf   : > { %v195_v31 = vsel %vm192_vm4, %v187_v27, %v194_v30 }
 0x1d0   : > { %197 = vst.msk [vmem:[%s155_s20] sm:$0xff] %vm196_vm5, %v195_v31 }
 0x1d1 PF: > { %s12_s9 = sadd.s32 1, %s294_s9  }
 0x1d2   : > { %p9_p4 = scmp.ge.s32.totalorder %s12_s9, 4  }
 0x1d4   :  { %11 = sbr.rel (!%p9_p4) target bundleno = 1 (0x1), region = 61 }

</bundles_post_ra>
